<compile_context>
chip_gen: v6e
topology: v6e:2x2x1
jax: 0.10.0
libtpu: 0.0.40
codegen_flags: <defaults>
</compile_context>

<pallas_src>
import functools

import jax
import jax.numpy as jnp
from jax.experimental import pallas as pl
from jax.experimental.pallas import tpu as pltpu

BN_EPS = 1e-5


def _round_up(x, m):
    return (x + m - 1) // m * m


def _div_tile(dim, max_tile, mult=128):
    """Largest multiple of `mult` that divides `dim` and is <= max_tile.

    `dim` is always a multiple of `mult` (padded dims), so this terminates at `mult`.
    """
    t = (min(max_tile, dim) // mult) * mult
    while t > mult and dim % t:
        t -= mult
    return t


# ----------------------------- Pallas kernels -----------------------------

def _matmul_kernel(*refs, activation, has_residual):
    """Tiled matmul with fused scale/bias (+ residual) (+ ReLU) epilogue.

    Grid is (M tiles, N tiles, K tiles) with K innermost; the f32 accumulator
    scratch is (tm, tn) and the epilogue runs on the last K step.
    """
    if has_residual:
        x_ref, w_ref, s_ref, b_ref, r_ref, o_ref, acc_ref = refs
    else:
        x_ref, w_ref, s_ref, b_ref, o_ref, acc_ref = refs
        r_ref = None

    k = pl.program_id(2)

    @pl.when(k == 0)
    def _():
        acc_ref[...] = jnp.zeros_like(acc_ref)

    acc_ref[...] += jnp.dot(x_ref[...], w_ref[...],
                            preferred_element_type=jnp.float32)

    @pl.when(k == pl.num_programs(2) - 1)
    def _():
        # Epilogue math stays in f32 (v5e VPU has no bf16 ALU); cast only at the store.
        y = acc_ref[...] * s_ref[...] + b_ref[...]
        if has_residual:
            y = y + r_ref[...].astype(jnp.float32)
        if activation == "relu":
            y = jnp.maximum(y, 0.0)
        o_ref[...] = y.astype(o_ref.dtype)


def _max9_kernel(x_ref, o_ref):
    o_ref[...] = jnp.max(x_ref[...], axis=0)


def _gap_kernel(x_ref, o_ref):
    o_ref[...] = jnp.mean(x_ref[...].astype(jnp.float32), axis=1, keepdims=True)


# ----------------------------- matmul wrapper -----------------------------

def matmul_packed(x, mp, activation="none", residual=None,
                  out_dtype=jnp.bfloat16):
    """act((x @ W) * scale + bias [+ residual]).

    x: (M, K).  mp: dict with pre-padded bf16 weight (Kp, Np) and f32 scale/bias (1, Np).
    residual (optional): (M, Nout) added before the activation.
    """
    M, K = x.shape
    N = mp["N"]
    assert K == mp["K"], (K, mp["K"])
    wp, sp, bp = mp["w"], mp["scale"], mp["bias"]
    Kp, Np = wp.shape

    tm = min(512, _round_up(M, 16))           # bf16 sublane tile of 16
    tn = _div_tile(Np, 512)
    tk = _div_tile(Kp, 768)
    Mp = _round_up(M, tm)

    xp = x.astype(jnp.bfloat16)
    if (Mp, Kp) != (M, K):
        xp = jnp.pad(xp, ((0, Mp - M), (0, Kp - K)))

    inputs = [xp, wp, sp, bp]
    in_specs = [
        pl.BlockSpec((tm, tk), lambda i, j, k: (i, k)),
        pl.BlockSpec((tk, tn), lambda i, j, k: (k, j)),
        pl.BlockSpec((1, tn), lambda i, j, k: (0, j)),
        pl.BlockSpec((1, tn), lambda i, j, k: (0, j)),
    ]
    has_residual = residual is not None
    if has_residual:
        rp = residual.astype(jnp.bfloat16)
        if (Mp, Np) != residual.shape:
            rp = jnp.pad(rp, ((0, Mp - M), (0, Np - residual.shape[1])))
        inputs.append(rp)
        in_specs.append(pl.BlockSpec((tm, tn), lambda i, j, k: (i, j)))

    out = pl.pallas_call(
        functools.partial(_matmul_kernel, activation=activation,
                          has_residual=has_residual),
        out_shape=jax.ShapeDtypeStruct((Mp, Np), out_dtype),
        grid_spec=pltpu.PrefetchScalarGridSpec(
            num_scalar_prefetch=0,
            grid=(Mp // tm, Np // tn, Kp // tk),
            in_specs=in_specs,
            out_specs=pl.BlockSpec((tm, tn), lambda i, j, k: (i, j)),
            scratch_shapes=[pltpu.VMEM((tm, tn), jnp.float32)],
        ),
        compiler_params=pltpu.CompilerParams(
            dimension_semantics=("parallel", "parallel", "arbitrary")),
    )(*inputs)
    if (Mp, Np) == (M, N):
        return out
    return out[:M, :N]


# ----------------------------- conv / pool glue -----------------------------

def _im2col(x, kh, kw, stride, pad):
    N, H, W, C = x.shape
    OH = (H + 2 * pad - kh) // stride + 1
    OW = (W + 2 * pad - kw) // stride + 1
    if kh == 1 and kw == 1 and pad == 0:
        xs = x if stride == 1 else x[:, ::stride, ::stride, :]
        return xs.reshape(N * OH * OW, C), (N, OH, OW)
    xp = jnp.pad(x, ((0, 0), (pad, pad), (pad, pad), (0, 0)))
    cols = [xp[:, i:i + stride * OH:stride, j:j + stride * OW:stride, :]
            for i in range(kh) for j in range(kw)]
    patches = jnp.concatenate(cols, axis=-1)          # (N, OH, OW, kh*kw*C) bf16
    return patches.reshape(N * OH * OW, kh * kw * C), (N, OH, OW)


def conv_bn_act(x, mp, kh, kw, stride, pad, relu, residual=None):
    cols, (N, OH, OW) = _im2col(x, kh, kw, stride, pad)
    res2 = None
    if residual is not None:
        res2 = residual.reshape(N * OH * OW, residual.shape[-1])
    y = matmul_packed(cols, mp, "relu" if relu else "none", residual=res2)
    return y.reshape(N, OH, OW, mp["N"])


def maxpool_3x3_s2_p1(x):
    N, H, W, C = x.shape
    OH = (H + 2 - 3) // 2 + 1
    OW = (W + 2 - 3) // 2 + 1
    xp = jnp.pad(x, ((0, 0), (1, 1), (1, 1), (0, 0)),
                 constant_values=-jnp.inf)
    taps = []
    for i in range(3):
        for j in range(3):
            taps.append(xp[:, i:i + 2 * OH:2, j:j + 2 * OW:2, :]
                        .reshape(N * OH * OW, C))
    stacked = jnp.stack(taps, axis=0)                  # (9, M, C) bf16
    M = N * OH * OW
    tm = min(512, _round_up(M, 16))
    Mp = _round_up(M, tm)
    if Mp != M:
        stacked = jnp.pad(stacked, ((0, 0), (0, Mp - M), (0, 0)))
    out = pl.pallas_call(
        _max9_kernel,
        out_shape=jax.ShapeDtypeStruct((Mp, C), x.dtype),
        grid_spec=pltpu.PrefetchScalarGridSpec(
            num_scalar_prefetch=0,
            grid=(Mp // tm,),
            in_specs=[pl.BlockSpec((9, tm, C), lambda i: (0, i, 0))],
            out_specs=pl.BlockSpec((tm, C), lambda i: (i, 0)),
        ),
        compiler_params=pltpu.CompilerParams(dimension_semantics=("parallel",)),
    )(stacked)
    return out[:M].reshape(N, OH, OW, C)


def global_avgpool(x):
    N, H, W, C = x.shape
    x3 = x.reshape(N, H * W, C)
    out = pl.pallas_call(
        _gap_kernel,
        out_shape=jax.ShapeDtypeStruct((N, 1, C), jnp.float32),
        grid_spec=pltpu.PrefetchScalarGridSpec(
            num_scalar_prefetch=0,
            grid=(N,),
            in_specs=[pl.BlockSpec((1, H * W, C), lambda i: (i, 0, 0))],
            out_specs=pl.BlockSpec((1, 1, C), lambda i: (i, 0, 0)),
        ),
        compiler_params=pltpu.CompilerParams(dimension_semantics=("parallel",)),
    )(x3)
    return out.reshape(N, C)


# ----------------------------- parameters -----------------------------

def _pack_matmul_params(w, scale, bias):
    """Pre-pad (once, at build time) weight to (Kp, Np) bf16 and scale/bias to (1, Np) f32."""
    K, N = w.shape
    Kp, Np = _round_up(K, 128), _round_up(N, 128)
    return {
        "w": jnp.pad(w, ((0, Kp - K), (0, Np - N))).astype(jnp.bfloat16),
        "scale": jnp.pad(scale, (0, Np - N)).reshape(1, Np).astype(jnp.float32),
        "bias": jnp.pad(bias, (0, Np - N)).reshape(1, Np).astype(jnp.float32),
        "K": K, "N": N,
    }


def _conv_params(key, kh, kw, cin, cout):
    # kaiming_normal (fan_in) for conv weights, stored as (KH*KW*Cin, Cout);
    # BN in eval mode with fresh stats folds to scale = 1/sqrt(1+eps), bias = 0.
    std = (2.0 / (kh * kw * cin)) ** 0.5
    w = jax.random.normal(key, (kh * kw * cin, cout), jnp.float32) * std
    scale = jnp.full((cout,), 1.0 / (1.0 + BN_EPS) ** 0.5, jnp.float32)
    bias = jnp.zeros((cout,), jnp.float32)
    return _pack_matmul_params(w, scale, bias)


def build_params(key, class_num):
    keys = iter(jax.random.split(key, 64))
    params = {"conv1": _conv_params(next(keys), 7, 7, 3, 64)}
    cfg = [("layer1", 64, 3, 1), ("layer2", 128, 4, 2),
           ("layer3", 256, 6, 2), ("layer4", 512, 3, 2)]
    inplanes = 64
    for name, planes, blocks, stride in cfg:
        blks = []
        for b in range(blocks):
            s = stride if b == 0 else 1
            blk = {
                "conv1": _conv_params(next(keys), 1, 1, inplanes, planes),
                "conv2": _conv_params(next(keys), 3, 3, planes, planes),
                "conv3": _conv_params(next(keys), 1, 1, planes, planes * 4),
                "stride": s,
            }
            if s != 1 or inplanes != planes * 4:
                blk["downsample"] = _conv_params(next(keys), 1, 1, inplanes, planes * 4)
            inplanes = planes * 4
            blks.append(blk)
        params[name] = blks

    # ClassBlock(2048, class_num, droprate=0.5): Linear(2048,512)+BN1d+Dropout, Linear(512,class_num)
    fc1_std = (2.0 / 512) ** 0.5                       # kaiming_normal fan_out
    fc1_w = jax.random.normal(next(keys), (2048, 512), jnp.float32) * fc1_std
    bn_gamma = 1.0 + 0.02 * jax.random.normal(next(keys), (512,), jnp.float32)
    fc1_scale = bn_gamma / (1.0 + BN_EPS) ** 0.5       # folded BN1d (mean=0, var=1, beta=0)
    fc1_bias = jnp.zeros((512,), jnp.float32)          # linear bias 0 folded through BN
    params["fc1"] = _pack_matmul_params(fc1_w, fc1_scale, fc1_bias)

    fc2_w = jax.random.normal(next(keys), (512, class_num), jnp.float32) * 0.001
    params["fc2"] = _pack_matmul_params(fc2_w,
                                        jnp.ones((class_num,), jnp.float32),
                                        jnp.zeros((class_num,), jnp.float32))
    return params


# ----------------------------- forward pass -----------------------------

def bottleneck_forward(x, p):
    out = conv_bn_act(x, p["conv1"], 1, 1, 1, 0, relu=True)
    out = conv_bn_act(out, p["conv2"], 3, 3, p["stride"], 1, relu=True)
    if "downsample" in p:
        identity = conv_bn_act(x, p["downsample"], 1, 1, p["stride"], 0, relu=False)
    else:
        identity = x
    # conv3 + BN + residual add + ReLU fused in one matmul epilogue.
    return conv_bn_act(out, p["conv3"], 1, 1, 1, 0, relu=True, residual=identity)


def ft_net_forward(params, x_nchw):
    x = jnp.transpose(x_nchw, (0, 2, 3, 1)).astype(jnp.bfloat16)   # NCHW -> NHWC bf16
    x = conv_bn_act(x, params["conv1"], 7, 7, 2, 3, relu=True)     # conv1+bn1+relu
    x = maxpool_3x3_s2_p1(x)                                       # maxpool 3x3 s2 p1
    for name in ("layer1", "layer2", "layer3", "layer4"):
        for blk in params[name]:
            x = bottleneck_forward(x, blk)
    feat = global_avgpool(x)                                       # (N, 2048) f32
    # ClassBlock: Linear(2048,512)+BN1d (folded); Dropout = identity (eval mode)
    h = matmul_packed(feat, params["fc1"], activation="none", out_dtype=jnp.float32)
    logits = matmul_packed(h, params["fc2"], activation="none", out_dtype=jnp.float32)
    return logits


if __name__ == "__main__":
    class_num = 10
    x = jax.random.normal(jax.random.PRNGKey(0), (2, 3, 32, 32), jnp.float32)
    params = build_params(jax.random.PRNGKey(42), class_num)
    out = jax.block_until_ready(ft_net_forward(params, x))
    assert out.shape == (2, class_num), out.shape
    assert bool(jnp.all(jnp.isfinite(out)))
    print("KERNEL_OK")
</pallas_src>

<mosaic_0001>
module attributes {stable_mosaic.version = 11 : i64} {
  func.func @_matmul_kernel(%arg0: i32, %arg1: i32, %arg2: i32, %arg3: memref<512x256xbf16, #tpu.memory_space<vmem>>, %arg4: memref<256x128xbf16, #tpu.memory_space<vmem>>, %arg5: memref<1x128xf32, #tpu.memory_space<vmem>>, %arg6: memref<1x128xf32, #tpu.memory_space<vmem>>, %arg7: memref<512x128xbf16, #tpu.memory_space<vmem>>, %arg8: memref<512x128xf32, #tpu.memory_space<vmem>>) attributes {dimension_semantics = [#tpu.dimension_semantics<parallel>, #tpu.dimension_semantics<parallel>, #tpu.dimension_semantics<arbitrary>], iteration_bounds = array<i64: 1, 1, 1>, scalar_prefetch = 0 : i64, scratch_operands = 1 : i64, tpu.core_type = #tpu.core_type<tc>, window_params = [{transform_indices = @transform_0, window_bounds = array<i64: 512, 256>}, {transform_indices = @transform_1, window_bounds = array<i64: 256, 128>}, {transform_indices = @transform_2, window_bounds = array<i64: 1, 128>}, {transform_indices = @transform_3, window_bounds = array<i64: 1, 128>}, {transform_indices = @transform_4, window_bounds = array<i64: 512, 128>}]} {
    %c0_i32 = arith.constant 0 : i32
    %0 = arith.cmpi eq, %arg2, %c0_i32 : i32
    %1 = arith.extui %0 : i1 to i32
    %c0_i32_0 = arith.constant 0 : i32
    %2 = arith.cmpi ne, %1, %c0_i32_0 : i32
    scf.if %2 {
      %cst_10 = arith.constant 0.000000e+00 : f32
      %12 = vector.broadcast %cst_10 : f32 to vector<512x128xf32>
      %c0_11 = arith.constant 0 : index
      %c0_12 = arith.constant 0 : index
      %13 = vector.load %arg8[%c0_11, %c0_12] : memref<512x128xf32, #tpu.memory_space<vmem>>, vector<512x128xf32>
      tpu.vector_store %arg8[%c0_11, %c0_12], %12 {strides = array<i32>} : memref<512x128xf32, #tpu.memory_space<vmem>>, vector<512x128xf32>,
    } else {
    }
    %c0 = arith.constant 0 : index
    %c0_1 = arith.constant 0 : index
    %3 = vector.load %arg8[%c0, %c0_1] : memref<512x128xf32, #tpu.memory_space<vmem>>, vector<512x128xf32>
    %c0_2 = arith.constant 0 : index
    %c0_3 = arith.constant 0 : index
    %4 = vector.load %arg3[%c0_2, %c0_3] : memref<512x256xbf16, #tpu.memory_space<vmem>>, vector<512x256xbf16>
    %c0_4 = arith.constant 0 : index
    %c0_5 = arith.constant 0 : index
    %5 = vector.load %arg4[%c0_4, %c0_5] : memref<256x128xbf16, #tpu.memory_space<vmem>>, vector<256x128xbf16>
    %cst = arith.constant dense<0.000000e+00> : vector<512x128xf32>
    %6 = tpu.matmul %4, %5, %cst {dimension_numbers = #tpu.dot_dimension_numbers<[1], [0], [0], [1], [0, 0, 1, 1], [], []>} : vector<512x256xbf16>, vector<256x128xbf16>, vector<512x128xf32> -> vector<512x128xf32>
    %7 = arith.addf %3, %6 : vector<512x128xf32>
    %c0_6 = arith.constant 0 : index
    %c0_7 = arith.constant 0 : index
    %8 = vector.load %arg8[%c0_6, %c0_7] : memref<512x128xf32, #tpu.memory_space<vmem>>, vector<512x128xf32>
    tpu.vector_store %arg8[%c0_6, %c0_7], %7 {strides = array<i32>} : memref<512x128xf32, #tpu.memory_space<vmem>>, vector<512x128xf32>,
    %c0_i32_8 = arith.constant 0 : i32
    %9 = arith.cmpi eq, %arg2, %c0_i32_8 : i32
    %10 = arith.extui %9 : i1 to i32
    %c0_i32_9 = arith.constant 0 : i32
    %11 = arith.cmpi ne, %10, %c0_i32_9 : i32
    scf.if %11 {
      %c0_10 = arith.constant 0 : index
      %c0_11 = arith.constant 0 : index
      %12 = vector.load %arg8[%c0_10, %c0_11] : memref<512x128xf32, #tpu.memory_space<vmem>>, vector<512x128xf32>
      %c0_12 = arith.constant 0 : index
      %c0_13 = arith.constant 0 : index
      %13 = vector.load %arg5[%c0_12, %c0_13] : memref<1x128xf32, #tpu.memory_space<vmem>>, vector<1x128xf32>
      %14 = vector.broadcast %13 : vector<1x128xf32> to vector<512x128xf32>
      %15 = arith.mulf %12, %14 : vector<512x128xf32>
      %c0_14 = arith.constant 0 : index
      %c0_15 = arith.constant 0 : index
      %16 = vector.load %arg6[%c0_14, %c0_15] : memref<1x128xf32, #tpu.memory_space<vmem>>, vector<1x128xf32>
      %17 = vector.broadcast %16 : vector<1x128xf32> to vector<512x128xf32>
      %18 = arith.addf %15, %17 : vector<512x128xf32>
      %cst_16 = arith.constant 0.000000e+00 : f32
      %19 = vector.broadcast %cst_16 : f32 to vector<512x128xf32>
      %20 = arith.maximumf %18, %19 : vector<512x128xf32>
      %21 = arith.truncf %20 : vector<512x128xf32> to vector<512x128xbf16>
      %c0_17 = arith.constant 0 : index
      %c0_18 = arith.constant 0 : index
      %22 = vector.load %arg7[%c0_17, %c0_18] : memref<512x128xbf16, #tpu.memory_space<vmem>>, vector<512x128xbf16>
      tpu.vector_store %arg7[%c0_17, %c0_18], %21 {strides = array<i32>} : memref<512x128xbf16, #tpu.memory_space<vmem>>, vector<512x128xbf16>,
    } else {
    }
    return
  }
  func.func @transform_0(%arg0: i32, %arg1: i32, %arg2: i32) -> (i32, i32) {
    %c0_i32 = arith.constant 0 : i32
    return %arg0, %arg2 : i32, i32
  }
  func.func @transform_1(%arg0: i32, %arg1: i32, %arg2: i32) -> (i32, i32) {
    %c0_i32 = arith.constant 0 : i32
    return %arg2, %arg1 : i32, i32
  }
  func.func @transform_2(%arg0: i32, %arg1: i32, %arg2: i32) -> (i32, i32) {
    %c0_i32 = arith.constant 0 : i32
    %c0_i32_0 = arith.constant 0 : i32
    return %c0_i32, %arg1 : i32, i32
  }
  func.func @transform_3(%arg0: i32, %arg1: i32, %arg2: i32) -> (i32, i32) {
    %c0_i32 = arith.constant 0 : i32
    %c0_i32_0 = arith.constant 0 : i32
    return %c0_i32, %arg1 : i32, i32
  }
  func.func @transform_4(%arg0: i32, %arg1: i32, %arg2: i32) -> (i32, i32) {
    %c0_i32 = arith.constant 0 : i32
    return %arg0, %arg1 : i32, i32
  }
}

</mosaic_0001>

<bundles_post_ra>
// kernel: tpu_custom_call.1
= control target key start
LH: loop header
LB: loop body
LE: loop exit
PB: predicated region body
PF: predicated region fallthrough
CT: control target
= control target key end

     0   :  { %9 = vsyncpa [#allocation4], 0  ;;  %s2556_s0 = inlined_call_operand.hbm [shape: bf16[512,256], index: 0, kind: input, shape index: {}]   ;;  %s2557_s1 = inlined_call_operand.hbm [shape: bf16[256,128], index: 1, kind: input, shape index: {}]   ;;  %s2558_s2 = inlined_call_operand.vmem [shape: f32[1,128], index: 2, kind: input, shape index: {}]   ;;  %s2559_s3 = inlined_call_operand.vmem [shape: f32[1,128], index: 3, kind: input, shape index: {}]   ;;  %s2560_s4 = inlined_call_operand.hbm [shape: bf16[512,128], index: 4, kind: output, shape index: {}]  }
   0x1   :  { %10 = vsyncpa [#allocation7], 0 }
   0x2   :  { %11 = vsyncpa [#allocation5], 0  ;;  %s2338_s15 = smov [#allocation3]  }
   0x3   :  { %s17_s16 = sshll.u32 %s2338_s15, 4  ;;  %s18_s16 = int_to_ptr.vmem [resolvable:$true] %s17_s16 }
   0x4   :  { %s2280_s17 = scalar_lea.vmem %s18_s16, 8192  ;;  %p2285_p1 = scmp.lt.s32.totalorder %s18_s16, %s18_s16 }
   0x5   :  { %p2281_p0 = scmp.ne.s32.totalorder %s18_s16, %s2280_s17  ;;  %p2286_p2 = scmp.lt.s32.totalorder %s2280_s17, %s2280_s17 }
   0x7   :  { %p2287_p3 = por %p2286_p2, %p2285_p1 }
   0x9   :  { %p2288_p4 = pnand %p2287_p3, %p2281_p0 }
   0xb   :  { %2291 = shalt.err (!%p2288_p4)
}
   0xc   :  { %s2339_s18 = smov 128   ;;  %s2340_s19 = smov 8  }
   0xd   :  { %23 = dma.hbm_to_vmem [thread:$0]  %s2556_s0, 8192, %s18_s16, [#allocation4], %s2339_s18, %s2339_s18, %s2340_s19  }
   0xe   :  { %s2341_s22 = smov [#allocation6]  }
   0xf   :  { %s29_s23 = sshll.u32 %s2341_s22, 4  ;;  %s30_s23 = int_to_ptr.vmem [resolvable:$true] %s29_s23 }
  0x10   :  { %s2300_s24 = scalar_lea.vmem %s30_s23, 2048  ;;  %p2305_p6 = scmp.lt.s32.totalorder %s30_s23, %s30_s23 }
  0x11   :  { %p2301_p5 = scmp.ne.s32.totalorder %s30_s23, %s2300_s24  ;;  %p2306_p7 = scmp.lt.s32.totalorder %s2300_s24, %s2300_s24 }
  0x13   :  { %p2307_p8 = por %p2306_p7, %p2305_p6 }
  0x15   :  { %p2308_p9 = pnand %p2307_p8, %p2301_p5 }
  0x17   :  { %2311 = shalt.err (!%p2308_p9)
}
  0x18   :  { %s2342_s25 = smov 64   ;;  %s2343_s26 = smov 4  }
  0x19   :  { %35 = dma.hbm_to_vmem [thread:$0]  %s2557_s1, 2048, %s30_s23, [#allocation7], %s2342_s25, %s2342_s25, %s2343_s26  }
  0x1a   :  { %2332 = dma.done.wait [#allocation4], 8192  }
  0x1b   :  { %2333 = vsyncadd [#allocation4], 4294959104 }
  0x1c   :  { %2334 = dma.done.wait [#allocation7], 2048  }
  0x1d   :  { %2335 = vsyncadd [#allocation7], 4294965248  ;;  %v2344_v0 = vmov 0   ;;  %v2160_v1 = vld [vmem:[#allocation6 + $0x38] sm:$0xff]   ;;  %v2161_v2 = vld [vmem:[#allocation6 + $0x30] sm:$0xff]  }
  0x1e   :  { %691 = vmatprep.subr.bf16.mxu0 %v2344_v0  ;;  %2120 = vmatprep.subr.bf16.mxu1 %v2344_v0  ;;  %v2162_v3 = vld [vmem:[#allocation6 + $0x28] sm:$0xff]   ;;  %v2163_v4 = vld [vmem:[#allocation6 + $0x20] sm:$0xff]   ;;  %v2164_v5 = vld [vmem:[#allocation6 + $0x18] sm:$0xff]  }
  0x1f   :  { %692 = vmatpush1.bf16.msra.mxu0 %v2160_v1  ;;  %2136 = vmatpush1.bf16.msra.mxu1 %v2160_v1  ;;  %v2178_v6 = vld [vmem:[#allocation3 + $0x4] ss:$8 sps:$4 sm:$0xff]   ;;  %v2165_v7 = vld [vmem:[#allocation6 + $0x10] sm:$0xff]   ;;  %v2168_v11 = vld [vmem:[#allocation6 + $0x78] sm:$0xff]  }
  0x20   :  { %693 = vmatprep.subr.bf16.mxu0 %v2344_v0  ;;  %2121 = vmatprep.subr.bf16.mxu1 %v2344_v0  ;;  %v2181_v8 = vld [vmem:[#allocation3 + $0x104] ss:$8 sps:$4 sm:$0xff]   ;;  %v2169_v12 = vld [vmem:[#allocation6 + $0x70] sm:$0xff]   ;;  %v2172_v15 = vld [vmem:[#allocation6 + $0x58] sm:$0xff]  }
  0x21   :  { %723 = vmatprep.mubr.bf16.mxu0 %v2178_v6  ;;  %851 = vmatprep.mubr.bf16.mxu1 %v2181_v8  ;;  %v2166_v9 = vld [vmem:[#allocation6 + $0x8] sm:$0xff]   ;;  %v2167_v10 = vld [vmem:[#allocation6] sm:$0xff]   ;;  %v2173_v16 = vld [vmem:[#allocation6 + $0x50] sm:$0xff]  }
  0x22   :  { %v2170_v13 = vld [vmem:[#allocation6 + $0x68] sm:$0xff]   ;;  %v2171_v14 = vld [vmem:[#allocation6 + $0x60] sm:$0xff]   ;;  %v2182_v21 = vld [vmem:[#allocation3 + $0x14] ss:$8 sps:$4 sm:$0xff]  }
  0x23   :  { %694 = vmatpush1.bf16.msra.mxu0 %v2161_v2  ;;  %2137 = vmatpush1.bf16.msra.mxu1 %v2161_v2  ;;  %v2174_v17 = vld [vmem:[#allocation6 + $0x48] sm:$0xff]   ;;  %v2175_v18 = vld [vmem:[#allocation6 + $0x40] sm:$0xff]   ;;  %v2184_v22 = vld [vmem:[#allocation3 + $0x114] ss:$8 sps:$4 sm:$0xff]  }
  0x24   :  { %695 = vmatprep.subr.bf16.mxu0 %v2344_v0  ;;  %2122 = vmatprep.subr.bf16.mxu1 %v2344_v0  ;;  %v2176_v19 = vld [vmem:[#allocation3] ss:$8 sps:$4 sm:$0xff]   ;;  %v2186_v23 = vld [vmem:[#allocation3 + $0x10] ss:$8 sps:$4 sm:$0xff]   ;;  %v2188_v25 = vld [vmem:[#allocation3 + $0x24] ss:$8 sps:$4 sm:$0xff]  }
  0x25   :  { %v2179_v20 = vld [vmem:[#allocation3 + $0x100] ss:$8 sps:$4 sm:$0xff]   ;;  %v2187_v24 = vld [vmem:[#allocation3 + $0x110] ss:$8 sps:$4 sm:$0xff]   ;;  %v2190_v26 = vld [vmem:[#allocation3 + $0x124] ss:$8 sps:$4 sm:$0xff]  }
  0x26   :  { %v2192_v27 = vld [vmem:[#allocation3 + $0x20] ss:$8 sps:$4 sm:$0xff]   ;;  %v2194_v29 = vld [vmem:[#allocation3 + $0x34] ss:$8 sps:$4 sm:$0xff]   ;;  %v2198_v31 = vld [vmem:[#allocation3 + $0x30] ss:$8 sps:$4 sm:$0xff]  }
  0x27   :  { %696 = vmatpush1.bf16.msra.mxu0 %v2162_v3  ;;  %2138 = vmatpush1.bf16.msra.mxu1 %v2162_v3  ;;  %v2193_v28 = vld [vmem:[#allocation3 + $0x120] ss:$8 sps:$4 sm:$0xff]   ;;  %v2196_v30 = vld [vmem:[#allocation3 + $0x134] ss:$8 sps:$4 sm:$0xff]   ;;  %v2199_v32 = vld [vmem:[#allocation3 + $0x130] ss:$8 sps:$4 sm:$0xff]  }
  0x28   :  { %697 = vmatprep.subr.bf16.mxu0 %v2344_v0  ;;  %2123 = vmatprep.subr.bf16.mxu1 %v2344_v0  ;;  %v2200_v33 = vld [vmem:[#allocation3 + $0x44] ss:$8 sps:$4 sm:$0xff]   ;;  %v2204_v35 = vld [vmem:[#allocation3 + $0x40] ss:$8 sps:$4 sm:$0xff]   ;;  %v2206_v37 = vld [vmem:[#allocation3 + $0x54] ss:$8 sps:$4 sm:$0xff]  }
  0x29   :  { %v2202_v34 = vld [vmem:[#allocation3 + $0x144] ss:$8 sps:$4 sm:$0xff]   ;;  %v2205_v36 = vld [vmem:[#allocation3 + $0x140] ss:$8 sps:$4 sm:$0xff]   ;;  %v2208_v38 = vld [vmem:[#allocation3 + $0x154] ss:$8 sps:$4 sm:$0xff]  }
  0x2a   :  { %v2210_v39 = vld [vmem:[#allocation3 + $0x50] ss:$8 sps:$4 sm:$0xff]   ;;  %v2212_v41 = vld [vmem:[#allocation3 + $0x64] ss:$8 sps:$4 sm:$0xff]   ;;  %v2216_v43 = vld [vmem:[#allocation3 + $0x60] ss:$8 sps:$4 sm:$0xff]  }
  0x2b   :  { %698 = vmatpush1.bf16.msra.mxu0 %v2163_v4  ;;  %2139 = vmatpush1.bf16.msra.mxu1 %v2163_v4  ;;  %v2211_v40 = vld [vmem:[#allocation3 + $0x150] ss:$8 sps:$4 sm:$0xff]   ;;  %v2214_v42 = vld [vmem:[#allocation3 + $0x164] ss:$8 sps:$4 sm:$0xff]   ;;  %v2217_v44 = vld [vmem:[#allocation3 + $0x160] ss:$8 sps:$4 sm:$0xff]  }
  0x2c   :  { %699 = vmatprep.subr.bf16.mxu0 %v2344_v0  ;;  %2124 = vmatprep.subr.bf16.mxu1 %v2344_v0  ;;  %v2218_v45 = vld [vmem:[#allocation3 + $0x74] ss:$8 sps:$4 sm:$0xff]   ;;  %v2222_v47 = vld [vmem:[#allocation3 + $0x70] ss:$8 sps:$4 sm:$0xff]   ;;  %v2224_v49 = vld [vmem:[#allocation3 + $0x84] ss:$8 sps:$4 sm:$0xff]  }
  0x2d   :  { %v2220_v46 = vld [vmem:[#allocation3 + $0x174] ss:$8 sps:$4 sm:$0xff]   ;;  %v2223_v48 = vld [vmem:[#allocation3 + $0x170] ss:$8 sps:$4 sm:$0xff]   ;;  %v2226_v50 = vld [vmem:[#allocation3 + $0x184] ss:$8 sps:$4 sm:$0xff]  }
  0x2e   :  { %v2228_v51 = vld [vmem:[#allocation3 + $0x80] ss:$8 sps:$4 sm:$0xff]   ;;  %v2230_v53 = vld [vmem:[#allocation3 + $0x94] ss:$8 sps:$4 sm:$0xff]   ;;  %v2234_v55 = vld [vmem:[#allocation3 + $0x90] ss:$8 sps:$4 sm:$0xff]  }
  0x2f   :  { %700 = vmatpush1.bf16.msra.mxu0 %v2164_v5  ;;  %2140 = vmatpush1.bf16.msra.mxu1 %v2164_v5  ;;  %v2229_v52 = vld [vmem:[#allocation3 + $0x180] ss:$8 sps:$4 sm:$0xff]   ;;  %v2232_v54 = vld [vmem:[#allocation3 + $0x194] ss:$8 sps:$4 sm:$0xff]   ;;  %v2235_v56 = vld [vmem:[#allocation3 + $0x190] ss:$8 sps:$4 sm:$0xff]  }
  0x30   :  { %701 = vmatprep.subr.bf16.mxu0 %v2344_v0  ;;  %2125 = vmatprep.subr.bf16.mxu1 %v2344_v0  ;;  %v2236_v57 = vld [vmem:[#allocation3 + $0xa4] ss:$8 sps:$4 sm:$0xff]   ;;  %v2240_v59 = vld [vmem:[#allocation3 + $0xa0] ss:$8 sps:$4 sm:$0xff]   ;;  %v2242_v61 = vld [vmem:[#allocation3 + $0xb4] ss:$8 sps:$4 sm:$0xff]  }
  0x31   :  { %v2238_v58 = vld [vmem:[#allocation3 + $0x1a4] ss:$8 sps:$4 sm:$0xff]   ;;  %v2241_v60 = vld [vmem:[#allocation3 + $0x1a0] ss:$8 sps:$4 sm:$0xff]   ;;  %v2244_v62 = vld [vmem:[#allocation3 + $0x1b4] ss:$8 sps:$4 sm:$0xff]  }
  0x32   :  { %v2246_v63 = vld [vmem:[#allocation3 + $0xb0] ss:$8 sps:$4 sm:$0xff]   ;;  %v2248_v1 = vld [vmem:[#allocation3 + $0xc4] ss:$8 sps:$4 sm:$0xff]   ;;  %v2252_v3 = vld [vmem:[#allocation3 + $0xc0] ss:$8 sps:$4 sm:$0xff]  }
  0x33   :  { %702 = vmatpush1.bf16.msra.mxu0 %v2165_v7  ;;  %2141 = vmatpush1.bf16.msra.mxu1 %v2165_v7  ;;  %v2250_v2 = vld [vmem:[#allocation3 + $0x1c4] ss:$8 sps:$4 sm:$0xff]   ;;  %v2253_v4 = vld [vmem:[#allocation3 + $0x1c0] ss:$8 sps:$4 sm:$0xff]   ;;  %v2254_v5 = vld [vmem:[#allocation3 + $0xd4] ss:$8 sps:$4 sm:$0xff]  }
  0x34   :  { %703 = vmatprep.subr.bf16.mxu0 %v2344_v0  ;;  %2126 = vmatprep.subr.bf16.mxu1 %v2344_v0  ;;  %v2256_v6 = vld [vmem:[#allocation3 + $0x1d4] ss:$8 sps:$4 sm:$0xff]   ;;  %v2258_v7 = vld [vmem:[#allocation3 + $0xd0] ss:$8 sps:$4 sm:$0xff]  }
  0x35   :  { %v2259_v8 = vld [vmem:[#allocation3 + $0x1d0] ss:$8 sps:$4 sm:$0xff]  }
  0x37   :  { %704 = vmatpush1.bf16.msra.mxu0 %v2166_v9  ;;  %2142 = vmatpush1.bf16.msra.mxu1 %v2166_v9  ;;  %v2260_v9 = vld [vmem:[#allocation3 + $0xe4] ss:$8 sps:$4 sm:$0xff]  }
  0x38   :  { %705 = vmatprep.subr.bf16.mxu0 %v2344_v0  ;;  %2127 = vmatprep.subr.bf16.mxu1 %v2344_v0 }
  0x3b   :  { %706 = vmatpush1.bf16.msra.mxu0 %v2167_v10  ;;  %2143 = vmatpush1.bf16.msra.mxu1 %v2167_v10  ;;  %v2262_v10 = vld [vmem:[#allocation3 + $0x1e4] ss:$8 sps:$4 sm:$0xff]  }
  0x3c   :  { %707 = vmatprep.subr.bf16.mxu0 %v2344_v0  ;;  %2128 = vmatprep.subr.bf16.mxu1 %v2344_v0 }
  0x3f   :  { %708 = vmatpush2.bf16.msra.mxu0 %v2168_v11  ;;  %2144 = vmatpush2.bf16.msra.mxu1 %v2168_v11  ;;  %v2264_v11 = vld [vmem:[#allocation3 + $0xe0] ss:$8 sps:$4 sm:$0xff]  }
  0x40   :  { %709 = vmatprep.subr.bf16.mxu0 %v2344_v0  ;;  %2129 = vmatprep.subr.bf16.mxu1 %v2344_v0 }
  0x43   :  { %710 = vmatpush2.bf16.msra.mxu0 %v2169_v12  ;;  %2145 = vmatpush2.bf16.msra.mxu1 %v2169_v12  ;;  %v2265_v12 = vld [vmem:[#allocation3 + $0x1e0] ss:$8 sps:$4 sm:$0xff]  }
  0x44   :  { %711 = vmatprep.subr.bf16.mxu0 %v2344_v0  ;;  %2130 = vmatprep.subr.bf16.mxu1 %v2344_v0 }
  0x47   :  { %712 = vmatpush2.bf16.msra.mxu0 %v2170_v13  ;;  %2146 = vmatpush2.bf16.msra.mxu1 %v2170_v13  ;;  %v2266_v13 = vld [vmem:[#allocation3 + $0xf4] ss:$8 sps:$4 sm:$0xff]  }
  0x48   :  { %713 = vmatprep.subr.bf16.mxu0 %v2344_v0  ;;  %2131 = vmatprep.subr.bf16.mxu1 %v2344_v0 }
  0x4b   :  { %714 = vmatpush2.bf16.msra.mxu0 %v2171_v14  ;;  %2147 = vmatpush2.bf16.msra.mxu1 %v2171_v14  ;;  %v2268_v14 = vld [vmem:[#allocation3 + $0x1f4] ss:$8 sps:$4 sm:$0xff]  }
  0x4c   :  { %715 = vmatprep.subr.bf16.mxu0 %v2344_v0  ;;  %2132 = vmatprep.subr.bf16.mxu1 %v2344_v0 }
  0x4f   :  { %716 = vmatpush2.bf16.msra.mxu0 %v2172_v15  ;;  %2148 = vmatpush2.bf16.msra.mxu1 %v2172_v15  ;;  %v2270_v15 = vld [vmem:[#allocation3 + $0xf0] ss:$8 sps:$4 sm:$0xff]  }
  0x50   :  { %717 = vmatprep.subr.bf16.mxu0 %v2344_v0  ;;  %2133 = vmatprep.subr.bf16.mxu1 %v2344_v0 }
  0x53   :  { %718 = vmatpush2.bf16.msra.mxu0 %v2173_v16  ;;  %2149 = vmatpush2.bf16.msra.mxu1 %v2173_v16  ;;  %v2271_v16 = vld [vmem:[#allocation3 + $0x1f0] ss:$8 sps:$4 sm:$0xff]  }
  0x54   :  { %719 = vmatprep.subr.bf16.mxu0 %v2344_v0  ;;  %2134 = vmatprep.subr.bf16.mxu1 %v2344_v0 }
  0x57   :  { %720 = vmatpush2.bf16.msra.mxu0 %v2174_v17  ;;  %2150 = vmatpush2.bf16.msra.mxu1 %v2174_v17  ;;  %v2415_v17 = vld [vmem:[%s2558_s2] ss:$0 sm:$0xff]  ;;  %s2345_s2 = smov [#allocation8]  }
  0x58   :  { %721 = vmatprep.subr.bf16.mxu0 %v2344_v0  ;;  %2135 = vmatprep.subr.bf16.mxu1 %v2344_v0  ;;  %v2247_v0 = vld [vmem:[#allocation3 + $0x1b0] ss:$8 sps:$4 sm:$0xff]  }
  0x5b   :  { %722 = vmatpush2.bf16.msra.mxu0 %v2175_v18  ;;  %2151 = vmatpush2.bf16.msra.mxu1 %v2175_v18 }
  0x5e   :  { %724 = vmatmul.mubr.bf16.vlgmr.msra.gmra.mxu0 %v2176_v19  ;;  %852 = vmatmul.mubr.bf16.vlgmr.msra.gmra.mxu1 %v2179_v20 }
  0x5f   :  { %731 = vmatprep.mubr.bf16.mxu0 %v2182_v21  ;;  %859 = vmatprep.mubr.bf16.mxu1 %v2184_v22  ;;  %v2421_v21 = vld [vmem:[%s2559_s3] ss:$0 sm:$0xff]  ;;  %s1706_s3 = sshll.u32 %s2345_s2, 4  ;;  %s1707_s3 = int_to_ptr.vmem [resolvable:$true] %s1706_s3 }
  0x60   :  { %s2312_s5 = scalar_lea.vmem %s1707_s3, 4096  ;;  %p2317_p11 = scmp.lt.s32.totalorder %s1707_s3, %s1707_s3 }
  0x61   :  { %p2313_p10 = scmp.ne.s32.totalorder %s1707_s3, %s2312_s5  ;;  %p2318_p12 = scmp.lt.s32.totalorder %s2312_s5, %s2312_s5 }
  0x63   :  { %p2319_p13 = por %p2318_p12, %p2317_p11 }
  0x65   :  { %p2320_p0 = pnand %p2319_p13, %p2313_p10 }
  0x66   :  { %732 = vmatmul.mubr.bf16.gmra.mxu0 %v2186_v23  ;;  %860 = vmatmul.mubr.bf16.gmra.mxu1 %v2187_v24 }
  0x67   :  { %739 = vmatprep.mubr.bf16.mxu0 %v2188_v25  ;;  %867 = vmatprep.mubr.bf16.mxu1 %v2190_v26 }
  0x6e   :  { %740 = vmatmul.mubr.bf16.gmra.mxu0 %v2192_v27  ;;  %868 = vmatmul.mubr.bf16.gmra.mxu1 %v2193_v28 }
  0x6f   :  { %747 = vmatprep.mubr.bf16.mxu0 %v2194_v29  ;;  %875 = vmatprep.mubr.bf16.mxu1 %v2196_v30 }
  0x76   :  { %748 = vmatmul.mubr.bf16.gmra.mxu0 %v2198_v31  ;;  %876 = vmatmul.mubr.bf16.gmra.mxu1 %v2199_v32 }
  0x77   :  { %755 = vmatprep.mubr.bf16.mxu0 %v2200_v33  ;;  %883 = vmatprep.mubr.bf16.mxu1 %v2202_v34 }
  0x7e   :  { %756 = vmatmul.mubr.bf16.gmra.mxu0 %v2204_v35  ;;  %884 = vmatmul.mubr.bf16.gmra.mxu1 %v2205_v36 }
  0x7f   :  { %763 = vmatprep.mubr.bf16.mxu0 %v2206_v37  ;;  %891 = vmatprep.mubr.bf16.mxu1 %v2208_v38 }
  0x86   :  { %764 = vmatmul.mubr.bf16.gmra.mxu0 %v2210_v39  ;;  %892 = vmatmul.mubr.bf16.gmra.mxu1 %v2211_v40 }
  0x87   :  { %771 = vmatprep.mubr.bf16.mxu0 %v2212_v41  ;;  %899 = vmatprep.mubr.bf16.mxu1 %v2214_v42 }
  0x8e   :  { %772 = vmatmul.mubr.bf16.gmra.mxu0 %v2216_v43  ;;  %900 = vmatmul.mubr.bf16.gmra.mxu1 %v2217_v44 }
  0x8f   :  { %779 = vmatprep.mubr.bf16.mxu0 %v2218_v45  ;;  %907 = vmatprep.mubr.bf16.mxu1 %v2220_v46 }
  0x96   :  { %780 = vmatmul.mubr.bf16.gmra.mxu0 %v2222_v47  ;;  %908 = vmatmul.mubr.bf16.gmra.mxu1 %v2223_v48 }
  0x97   :  { %787 = vmatprep.mubr.bf16.mxu0 %v2224_v49  ;;  %915 = vmatprep.mubr.bf16.mxu1 %v2226_v50 }
  0x9e   :  { %788 = vmatmul.mubr.bf16.gmra.mxu0 %v2228_v51  ;;  %916 = vmatmul.mubr.bf16.gmra.mxu1 %v2229_v52 }
  0x9f   :  { %795 = vmatprep.mubr.bf16.mxu0 %v2230_v53  ;;  %923 = vmatprep.mubr.bf16.mxu1 %v2232_v54 }
  0xa6   :  { %796 = vmatmul.mubr.bf16.gmra.mxu0 %v2234_v55  ;;  %924 = vmatmul.mubr.bf16.gmra.mxu1 %v2235_v56 }
  0xa7   :  { %803 = vmatprep.mubr.bf16.mxu0 %v2236_v57  ;;  %931 = vmatprep.mubr.bf16.mxu1 %v2238_v58 }
  0xae   :  { %804 = vmatmul.mubr.bf16.gmra.mxu0 %v2240_v59  ;;  %932 = vmatmul.mubr.bf16.gmra.mxu1 %v2241_v60 }
  0xaf   :  { %811 = vmatprep.mubr.bf16.mxu0 %v2242_v61  ;;  %939 = vmatprep.mubr.bf16.mxu1 %v2244_v62 }
  0xb6   :  { %812 = vmatmul.mubr.bf16.gmra.mxu0 %v2246_v63  ;;  %940 = vmatmul.mubr.bf16.gmra.mxu1 %v2247_v0 }
  0xb7   :  { %819 = vmatprep.mubr.bf16.mxu0 %v2248_v1  ;;  %947 = vmatprep.mubr.bf16.mxu1 %v2250_v2 }
  0xbe   :  { %820 = vmatmul.mubr.bf16.gmra.mxu0 %v2252_v3  ;;  %948 = vmatmul.mubr.bf16.gmra.mxu1 %v2253_v4 }
  0xbf   :  { %827 = vmatprep.mubr.bf16.mxu0 %v2254_v5  ;;  %955 = vmatprep.mubr.bf16.mxu1 %v2256_v6 }
  0xc6   :  { %828 = vmatmul.mubr.bf16.gmra.mxu0 %v2258_v7  ;;  %956 = vmatmul.mubr.bf16.gmra.mxu1 %v2259_v8 }
  0xc7   :  { %835 = vmatprep.mubr.bf16.mxu0 %v2260_v9  ;;  %963 = vmatprep.mubr.bf16.mxu1 %v2262_v10 }
  0xce   :  { %836 = vmatmul.mubr.bf16.gmra.mxu0 %v2264_v11  ;;  %964 = vmatmul.mubr.bf16.gmra.mxu1 %v2265_v12 }
  0xcf   :  { %843 = vmatprep.mubr.bf16.mxu0 %v2266_v13  ;;  %971 = vmatprep.mubr.bf16.mxu1 %v2268_v14 }
  0xd6   :  { %844 = vmatmul.mubr.bf16.gmra.mxu0 %v2270_v15  ;;  %972 = vmatmul.mubr.bf16.gmra.mxu1 %v2271_v16 }
 0x11e   :  { %v725_v18 = vpop.f32.mrf.mxu0  ;;  %v853_v19 = vpop.f32.mrf.mxu1 }
 0x11f   :  { %v1182_v20 = vmul.f32 %v2415_v17, %v725_v18  ;;  %v1214_v22 = vmul.f32 %v2415_v17, %v853_v19 }
 0x120   :  { %v727_v23 = vpop.f32.mrf.mxu0  ;;  %v855_v24 = vpop.f32.mrf.mxu1 }
 0x121   :  { %v1253_v25 = vadd.f32 %v2421_v21, %v1182_v20  ;;  %v1285_v26 = vadd.f32 %v2421_v21, %v1214_v22 }
 0x122   :  { %v728_v27 = vpop.f32.mrf.mxu0  ;;  %v856_v28 = vpop.f32.mrf.mxu1 }
 0x123   :  { %v1183_v29 = vmul.f32 %v2415_v17, %v728_v27  ;;  %v1215_v30 = vmul.f32 %v2415_v17, %v856_v28  ;;  %v1317_v35 = vmax.f32 %v1253_v25, 0.0  ;;  %v1349_v36 = vmax.f32 %v1285_v26, 0.0 }
 0x124   :  { %v730_v31 = vpop.f32.mrf.mxu0  ;;  %v858_v32 = vpop.f32.mrf.mxu1 }
 0x125   :  { %v1254_v33 = vadd.f32 %v2421_v21, %v1183_v29  ;;  %v1286_v34 = vadd.f32 %v2421_v21, %v1215_v30 }
 0x126   :  { %v733_v37 = vpop.f32.mrf.mxu0  ;;  %v861_v38 = vpop.f32.mrf.mxu1 }
 0x127   :  { %v1318_v39 = vmax.f32 %v1254_v33, 0.0  ;;  %v1350_v40 = vmax.f32 %v1286_v34, 0.0  ;;  %v1184_v41 = vmul.f32 %v2415_v17, %v733_v37  ;;  %v1216_v42 = vmul.f32 %v2415_v17, %v861_v38 }
 0x128   :  { %v735_v43 = vpop.f32.mrf.mxu0  ;;  %v863_v44 = vpop.f32.mrf.mxu1 }
 0x129   :  { %v1932_v45 = vpack.c.bf16 %v1318_v39, %v1317_v35  ;;  %v2012_v46 = vpack.c.bf16 %v1350_v40, %v1349_v36  ;;  %v1255_v47 = vadd.f32 %v2421_v21, %v1184_v41  ;;  %v1287_v48 = vadd.f32 %v2421_v21, %v1216_v42 }
 0x12a   :  { %v736_v49 = vpop.f32.mrf.mxu0  ;;  %v864_v50 = vpop.f32.mrf.mxu1 }
 0x12b   :  { %1933 = vst [vmem:[#allocation8] sm:$0xff] %v1932_v45   ;;  %2104 = vst [vmem:[#allocation8 + $0x80] sm:$0xff] %v2012_v46   ;;  %v1185_v51 = vmul.f32 %v2415_v17, %v736_v49  ;;  %v1217_v52 = vmul.f32 %v2415_v17, %v864_v50  ;;  %v1319_v57 = vmax.f32 %v1255_v47, 0.0  ;;  %v1351_v58 = vmax.f32 %v1287_v48, 0.0 }
 0x12c   :  { %v738_v53 = vpop.f32.mrf.mxu0  ;;  %v866_v54 = vpop.f32.mrf.mxu1 }
 0x12d   :  { %v1256_v55 = vadd.f32 %v2421_v21, %v1185_v51  ;;  %v1288_v56 = vadd.f32 %v2421_v21, %v1217_v52 }
 0x12e   :  { %v741_v59 = vpop.f32.mrf.mxu0  ;;  %v869_v60 = vpop.f32.mrf.mxu1 }
 0x12f   :  { %v1320_v61 = vmax.f32 %v1256_v55, 0.0  ;;  %v1352_v62 = vmax.f32 %v1288_v56, 0.0  ;;  %v1186_v63 = vmul.f32 %v2415_v17, %v741_v59  ;;  %v1218_v0 = vmul.f32 %v2415_v17, %v869_v60 }
 0x130   :  { %v743_v1 = vpop.f32.mrf.mxu0  ;;  %v871_v2 = vpop.f32.mrf.mxu1 }
 0x131   :  { %v1937_v3 = vpack.c.bf16 %v1320_v61, %v1319_v57  ;;  %v2017_v4 = vpack.c.bf16 %v1352_v62, %v1351_v58  ;;  %v1257_v5 = vadd.f32 %v2421_v21, %v1186_v63  ;;  %v1289_v6 = vadd.f32 %v2421_v21, %v1218_v0 }
 0x132   :  { %v744_v7 = vpop.f32.mrf.mxu0  ;;  %v872_v8 = vpop.f32.mrf.mxu1 }
 0x133   :  { %2089 = vst [vmem:[#allocation8 + $0x8] sm:$0xff] %v1937_v3   ;;  %2105 = vst [vmem:[#allocation8 + $0x88] sm:$0xff] %v2017_v4   ;;  %v1187_v9 = vmul.f32 %v2415_v17, %v744_v7  ;;  %v1219_v10 = vmul.f32 %v2415_v17, %v872_v8  ;;  %v1321_v15 = vmax.f32 %v1257_v5, 0.0  ;;  %v1353_v16 = vmax.f32 %v1289_v6, 0.0 }
 0x134   :  { %v746_v11 = vpop.f32.mrf.mxu0  ;;  %v874_v12 = vpop.f32.mrf.mxu1 }
 0x135   :  { %v1258_v13 = vadd.f32 %v2421_v21, %v1187_v9  ;;  %v1290_v14 = vadd.f32 %v2421_v21, %v1219_v10 }
 0x136   :  { %v749_v18 = vpop.f32.mrf.mxu0  ;;  %v877_v19 = vpop.f32.mrf.mxu1 }
 0x137   :  { %v1322_v20 = vmax.f32 %v1258_v13, 0.0  ;;  %v1354_v22 = vmax.f32 %v1290_v14, 0.0  ;;  %v1188_v23 = vmul.f32 %v2415_v17, %v749_v18  ;;  %v1220_v24 = vmul.f32 %v2415_v17, %v877_v19 }
 0x138   :  { %v751_v25 = vpop.f32.mrf.mxu0  ;;  %v879_v26 = vpop.f32.mrf.mxu1 }
 0x139   :  { %v1942_v27 = vpack.c.bf16 %v1322_v20, %v1321_v15  ;;  %v2022_v28 = vpack.c.bf16 %v1354_v22, %v1353_v16  ;;  %v1259_v29 = vadd.f32 %v2421_v21, %v1188_v23  ;;  %v1291_v30 = vadd.f32 %v2421_v21, %v1220_v24 }
 0x13a   :  { %v752_v31 = vpop.f32.mrf.mxu0  ;;  %v880_v32 = vpop.f32.mrf.mxu1 }
 0x13b   :  { %2090 = vst [vmem:[#allocation8 + $0x10] sm:$0xff] %v1942_v27   ;;  %2106 = vst [vmem:[#allocation8 + $0x90] sm:$0xff] %v2022_v28   ;;  %v1189_v33 = vmul.f32 %v2415_v17, %v752_v31  ;;  %v1221_v34 = vmul.f32 %v2415_v17, %v880_v32  ;;  %v1323_v39 = vmax.f32 %v1259_v29, 0.0  ;;  %v1355_v40 = vmax.f32 %v1291_v30, 0.0 }
 0x13c   :  { %v754_v35 = vpop.f32.mrf.mxu0  ;;  %v882_v36 = vpop.f32.mrf.mxu1 }
 0x13d   :  { %v1260_v37 = vadd.f32 %v2421_v21, %v1189_v33  ;;  %v1292_v38 = vadd.f32 %v2421_v21, %v1221_v34 }
 0x13e   :  { %v757_v41 = vpop.f32.mrf.mxu0  ;;  %v885_v42 = vpop.f32.mrf.mxu1 }
 0x13f   :  { %v1324_v43 = vmax.f32 %v1260_v37, 0.0  ;;  %v1356_v44 = vmax.f32 %v1292_v38, 0.0  ;;  %v1190_v45 = vmul.f32 %v2415_v17, %v757_v41  ;;  %v1222_v46 = vmul.f32 %v2415_v17, %v885_v42 }
 0x140   :  { %v759_v47 = vpop.f32.mrf.mxu0  ;;  %v887_v48 = vpop.f32.mrf.mxu1 }
 0x141   :  { %v1947_v49 = vpack.c.bf16 %v1324_v43, %v1323_v39  ;;  %v2027_v50 = vpack.c.bf16 %v1356_v44, %v1355_v40  ;;  %v1261_v51 = vadd.f32 %v2421_v21, %v1190_v45  ;;  %v1293_v52 = vadd.f32 %v2421_v21, %v1222_v46 }
 0x142   :  { %v760_v53 = vpop.f32.mrf.mxu0  ;;  %v888_v54 = vpop.f32.mrf.mxu1 }
 0x143   :  { %2091 = vst [vmem:[#allocation8 + $0x18] sm:$0xff] %v1947_v49   ;;  %2107 = vst [vmem:[#allocation8 + $0x98] sm:$0xff] %v2027_v50   ;;  %v1191_v55 = vmul.f32 %v2415_v17, %v760_v53  ;;  %v1223_v56 = vmul.f32 %v2415_v17, %v888_v54  ;;  %v1325_v61 = vmax.f32 %v1261_v51, 0.0  ;;  %v1357_v62 = vmax.f32 %v1293_v52, 0.0 }
 0x144   :  { %v762_v57 = vpop.f32.mrf.mxu0  ;;  %v890_v58 = vpop.f32.mrf.mxu1 }
 0x145   :  { %v1262_v59 = vadd.f32 %v2421_v21, %v1191_v55  ;;  %v1294_v60 = vadd.f32 %v2421_v21, %v1223_v56 }
 0x146   :  { %v765_v63 = vpop.f32.mrf.mxu0  ;;  %v893_v0 = vpop.f32.mrf.mxu1 }
 0x147   :  { %v1326_v1 = vmax.f32 %v1262_v59, 0.0  ;;  %v1358_v2 = vmax.f32 %v1294_v60, 0.0  ;;  %v1192_v3 = vmul.f32 %v2415_v17, %v765_v63  ;;  %v1224_v4 = vmul.f32 %v2415_v17, %v893_v0 }
 0x148   :  { %v767_v5 = vpop.f32.mrf.mxu0  ;;  %v895_v6 = vpop.f32.mrf.mxu1 }
 0x149   :  { %v1952_v7 = vpack.c.bf16 %v1326_v1, %v1325_v61  ;;  %v2032_v8 = vpack.c.bf16 %v1358_v2, %v1357_v62  ;;  %v1263_v9 = vadd.f32 %v2421_v21, %v1192_v3  ;;  %v1295_v10 = vadd.f32 %v2421_v21, %v1224_v4 }
 0x14a   :  { %v768_v11 = vpop.f32.mrf.mxu0  ;;  %v896_v12 = vpop.f32.mrf.mxu1 }
 0x14b   :  { %2092 = vst [vmem:[#allocation8 + $0x20] sm:$0xff] %v1952_v7   ;;  %2108 = vst [vmem:[#allocation8 + $0xa0] sm:$0xff] %v2032_v8   ;;  %v1193_v13 = vmul.f32 %v2415_v17, %v768_v11  ;;  %v1225_v14 = vmul.f32 %v2415_v17, %v896_v12  ;;  %v1327_v20 = vmax.f32 %v1263_v9, 0.0  ;;  %v1359_v22 = vmax.f32 %v1295_v10, 0.0 }
 0x14c   :  { %v770_v15 = vpop.f32.mrf.mxu0  ;;  %v898_v16 = vpop.f32.mrf.mxu1 }
 0x14d   :  { %v1264_v18 = vadd.f32 %v2421_v21, %v1193_v13  ;;  %v1296_v19 = vadd.f32 %v2421_v21, %v1225_v14 }
 0x14e   :  { %v773_v23 = vpop.f32.mrf.mxu0  ;;  %v901_v24 = vpop.f32.mrf.mxu1 }
 0x14f   :  { %v1328_v25 = vmax.f32 %v1264_v18, 0.0  ;;  %v1360_v26 = vmax.f32 %v1296_v19, 0.0  ;;  %v1194_v27 = vmul.f32 %v2415_v17, %v773_v23  ;;  %v1226_v28 = vmul.f32 %v2415_v17, %v901_v24 }
 0x150   :  { %v775_v29 = vpop.f32.mrf.mxu0  ;;  %v903_v30 = vpop.f32.mrf.mxu1 }
 0x151   :  { %v1957_v31 = vpack.c.bf16 %v1328_v25, %v1327_v20  ;;  %v2037_v32 = vpack.c.bf16 %v1360_v26, %v1359_v22  ;;  %v1265_v33 = vadd.f32 %v2421_v21, %v1194_v27  ;;  %v1297_v34 = vadd.f32 %v2421_v21, %v1226_v28 }
 0x152   :  { %v776_v35 = vpop.f32.mrf.mxu0  ;;  %v904_v36 = vpop.f32.mrf.mxu1 }
 0x153   :  { %2093 = vst [vmem:[#allocation8 + $0x28] sm:$0xff] %v1957_v31   ;;  %2109 = vst [vmem:[#allocation8 + $0xa8] sm:$0xff] %v2037_v32   ;;  %v1195_v37 = vmul.f32 %v2415_v17, %v776_v35  ;;  %v1227_v38 = vmul.f32 %v2415_v17, %v904_v36  ;;  %v1329_v43 = vmax.f32 %v1265_v33, 0.0  ;;  %v1361_v44 = vmax.f32 %v1297_v34, 0.0 }
 0x154   :  { %v778_v39 = vpop.f32.mrf.mxu0  ;;  %v906_v40 = vpop.f32.mrf.mxu1 }
 0x155   :  { %v1266_v41 = vadd.f32 %v2421_v21, %v1195_v37  ;;  %v1298_v42 = vadd.f32 %v2421_v21, %v1227_v38 }
 0x156   :  { %v781_v45 = vpop.f32.mrf.mxu0  ;;  %v909_v46 = vpop.f32.mrf.mxu1 }
 0x157   :  { %v1330_v47 = vmax.f32 %v1266_v41, 0.0  ;;  %v1362_v48 = vmax.f32 %v1298_v42, 0.0  ;;  %v1196_v49 = vmul.f32 %v2415_v17, %v781_v45  ;;  %v1228_v50 = vmul.f32 %v2415_v17, %v909_v46 }
 0x158   :  { %v783_v51 = vpop.f32.mrf.mxu0  ;;  %v911_v52 = vpop.f32.mrf.mxu1 }
 0x159   :  { %v1962_v53 = vpack.c.bf16 %v1330_v47, %v1329_v43  ;;  %v2042_v54 = vpack.c.bf16 %v1362_v48, %v1361_v44  ;;  %v1267_v55 = vadd.f32 %v2421_v21, %v1196_v49  ;;  %v1299_v56 = vadd.f32 %v2421_v21, %v1228_v50 }
 0x15a   :  { %v784_v57 = vpop.f32.mrf.mxu0  ;;  %v912_v58 = vpop.f32.mrf.mxu1 }
 0x15b   :  { %2094 = vst [vmem:[#allocation8 + $0x30] sm:$0xff] %v1962_v53   ;;  %2110 = vst [vmem:[#allocation8 + $0xb0] sm:$0xff] %v2042_v54   ;;  %v1197_v59 = vmul.f32 %v2415_v17, %v784_v57  ;;  %v1229_v60 = vmul.f32 %v2415_v17, %v912_v58  ;;  %v1331_v1 = vmax.f32 %v1267_v55, 0.0  ;;  %v1363_v2 = vmax.f32 %v1299_v56, 0.0 }
 0x15c   :  { %v786_v61 = vpop.f32.mrf.mxu0  ;;  %v914_v62 = vpop.f32.mrf.mxu1 }
 0x15d   :  { %v1268_v63 = vadd.f32 %v2421_v21, %v1197_v59  ;;  %v1300_v0 = vadd.f32 %v2421_v21, %v1229_v60 }
 0x15e   :  { %v789_v3 = vpop.f32.mrf.mxu0  ;;  %v917_v4 = vpop.f32.mrf.mxu1 }
 0x15f   :  { %v1332_v5 = vmax.f32 %v1268_v63, 0.0  ;;  %v1364_v6 = vmax.f32 %v1300_v0, 0.0  ;;  %v1198_v7 = vmul.f32 %v2415_v17, %v789_v3  ;;  %v1230_v8 = vmul.f32 %v2415_v17, %v917_v4 }
 0x160   :  { %v791_v9 = vpop.f32.mrf.mxu0  ;;  %v919_v10 = vpop.f32.mrf.mxu1 }
 0x161   :  { %v1967_v11 = vpack.c.bf16 %v1332_v5, %v1331_v1  ;;  %v2047_v12 = vpack.c.bf16 %v1364_v6, %v1363_v2  ;;  %v1269_v13 = vadd.f32 %v2421_v21, %v1198_v7  ;;  %v1301_v14 = vadd.f32 %v2421_v21, %v1230_v8 }
 0x162   :  { %v792_v15 = vpop.f32.mrf.mxu0  ;;  %v920_v16 = vpop.f32.mrf.mxu1 }
 0x163   :  { %2095 = vst [vmem:[#allocation8 + $0x38] sm:$0xff] %v1967_v11   ;;  %2111 = vst [vmem:[#allocation8 + $0xb8] sm:$0xff] %v2047_v12   ;;  %v1199_v18 = vmul.f32 %v2415_v17, %v792_v15  ;;  %v1231_v19 = vmul.f32 %v2415_v17, %v920_v16  ;;  %v1333_v25 = vmax.f32 %v1269_v13, 0.0  ;;  %v1365_v26 = vmax.f32 %v1301_v14, 0.0 }
 0x164   :  { %v794_v20 = vpop.f32.mrf.mxu0  ;;  %v922_v22 = vpop.f32.mrf.mxu1 }
 0x165   :  { %v1270_v23 = vadd.f32 %v2421_v21, %v1199_v18  ;;  %v1302_v24 = vadd.f32 %v2421_v21, %v1231_v19 }
 0x166   :  { %v797_v27 = vpop.f32.mrf.mxu0  ;;  %v925_v28 = vpop.f32.mrf.mxu1 }
 0x167   :  { %v1334_v29 = vmax.f32 %v1270_v23, 0.0  ;;  %v1366_v30 = vmax.f32 %v1302_v24, 0.0  ;;  %v1200_v31 = vmul.f32 %v2415_v17, %v797_v27  ;;  %v1232_v32 = vmul.f32 %v2415_v17, %v925_v28 }
 0x168   :  { %v799_v33 = vpop.f32.mrf.mxu0  ;;  %v927_v34 = vpop.f32.mrf.mxu1 }
 0x169   :  { %v1972_v35 = vpack.c.bf16 %v1334_v29, %v1333_v25  ;;  %v2052_v36 = vpack.c.bf16 %v1366_v30, %v1365_v26  ;;  %v1271_v37 = vadd.f32 %v2421_v21, %v1200_v31  ;;  %v1303_v38 = vadd.f32 %v2421_v21, %v1232_v32 }
 0x16a   :  { %v800_v39 = vpop.f32.mrf.mxu0  ;;  %v928_v40 = vpop.f32.mrf.mxu1 }
 0x16b   :  { %2096 = vst [vmem:[#allocation8 + $0x40] sm:$0xff] %v1972_v35   ;;  %2112 = vst [vmem:[#allocation8 + $0xc0] sm:$0xff] %v2052_v36   ;;  %v1201_v41 = vmul.f32 %v2415_v17, %v800_v39  ;;  %v1233_v42 = vmul.f32 %v2415_v17, %v928_v40  ;;  %v1335_v47 = vmax.f32 %v1271_v37, 0.0  ;;  %v1367_v48 = vmax.f32 %v1303_v38, 0.0 }
 0x16c   :  { %v802_v43 = vpop.f32.mrf.mxu0  ;;  %v930_v44 = vpop.f32.mrf.mxu1 }
 0x16d   :  { %v1272_v45 = vadd.f32 %v2421_v21, %v1201_v41  ;;  %v1304_v46 = vadd.f32 %v2421_v21, %v1233_v42 }
 0x16e   :  { %v805_v49 = vpop.f32.mrf.mxu0  ;;  %v933_v50 = vpop.f32.mrf.mxu1 }
 0x16f   :  { %v1336_v51 = vmax.f32 %v1272_v45, 0.0  ;;  %v1368_v52 = vmax.f32 %v1304_v46, 0.0  ;;  %v1202_v53 = vmul.f32 %v2415_v17, %v805_v49  ;;  %v1234_v54 = vmul.f32 %v2415_v17, %v933_v50 }
 0x170   :  { %v807_v55 = vpop.f32.mrf.mxu0  ;;  %v935_v56 = vpop.f32.mrf.mxu1 }
 0x171   :  { %v1977_v57 = vpack.c.bf16 %v1336_v51, %v1335_v47  ;;  %v2057_v58 = vpack.c.bf16 %v1368_v52, %v1367_v48  ;;  %v1273_v59 = vadd.f32 %v2421_v21, %v1202_v53  ;;  %v1305_v60 = vadd.f32 %v2421_v21, %v1234_v54 }
 0x172   :  { %v808_v61 = vpop.f32.mrf.mxu0  ;;  %v936_v62 = vpop.f32.mrf.mxu1 }
 0x173   :  { %2097 = vst [vmem:[#allocation8 + $0x48] sm:$0xff] %v1977_v57   ;;  %2113 = vst [vmem:[#allocation8 + $0xc8] sm:$0xff] %v2057_v58   ;;  %v1203_v63 = vmul.f32 %v2415_v17, %v808_v61  ;;  %v1235_v0 = vmul.f32 %v2415_v17, %v936_v62  ;;  %v1337_v5 = vmax.f32 %v1273_v59, 0.0  ;;  %v1369_v6 = vmax.f32 %v1305_v60, 0.0 }
 0x174   :  { %v810_v1 = vpop.f32.mrf.mxu0  ;;  %v938_v2 = vpop.f32.mrf.mxu1 }
 0x175   :  { %v1274_v3 = vadd.f32 %v2421_v21, %v1203_v63  ;;  %v1306_v4 = vadd.f32 %v2421_v21, %v1235_v0 }
 0x176   :  { %v813_v7 = vpop.f32.mrf.mxu0  ;;  %v941_v8 = vpop.f32.mrf.mxu1 }
 0x177   :  { %v1338_v9 = vmax.f32 %v1274_v3, 0.0  ;;  %v1370_v10 = vmax.f32 %v1306_v4, 0.0  ;;  %v1204_v11 = vmul.f32 %v2415_v17, %v813_v7  ;;  %v1236_v12 = vmul.f32 %v2415_v17, %v941_v8 }
 0x178   :  { %v815_v13 = vpop.f32.mrf.mxu0  ;;  %v943_v14 = vpop.f32.mrf.mxu1 }
 0x179   :  { %v1982_v15 = vpack.c.bf16 %v1338_v9, %v1337_v5  ;;  %v2062_v16 = vpack.c.bf16 %v1370_v10, %v1369_v6  ;;  %v1275_v18 = vadd.f32 %v2421_v21, %v1204_v11  ;;  %v1307_v19 = vadd.f32 %v2421_v21, %v1236_v12 }
 0x17a   :  { %v816_v20 = vpop.f32.mrf.mxu0  ;;  %v944_v22 = vpop.f32.mrf.mxu1 }
 0x17b   :  { %2098 = vst [vmem:[#allocation8 + $0x50] sm:$0xff] %v1982_v15   ;;  %2114 = vst [vmem:[#allocation8 + $0xd0] sm:$0xff] %v2062_v16   ;;  %v1205_v23 = vmul.f32 %v2415_v17, %v816_v20  ;;  %v1237_v24 = vmul.f32 %v2415_v17, %v944_v22  ;;  %v1339_v29 = vmax.f32 %v1275_v18, 0.0  ;;  %v1371_v30 = vmax.f32 %v1307_v19, 0.0 }
 0x17c   :  { %v818_v25 = vpop.f32.mrf.mxu0  ;;  %v946_v26 = vpop.f32.mrf.mxu1 }
 0x17d   :  { %v1276_v27 = vadd.f32 %v2421_v21, %v1205_v23  ;;  %v1308_v28 = vadd.f32 %v2421_v21, %v1237_v24 }
 0x17e   :  { %v821_v31 = vpop.f32.mrf.mxu0  ;;  %v949_v32 = vpop.f32.mrf.mxu1 }
 0x17f   :  { %v1340_v33 = vmax.f32 %v1276_v27, 0.0  ;;  %v1372_v34 = vmax.f32 %v1308_v28, 0.0  ;;  %v1206_v35 = vmul.f32 %v2415_v17, %v821_v31  ;;  %v1238_v36 = vmul.f32 %v2415_v17, %v949_v32 }
 0x180   :  { %v823_v37 = vpop.f32.mrf.mxu0  ;;  %v951_v38 = vpop.f32.mrf.mxu1 }
 0x181   :  { %v1987_v39 = vpack.c.bf16 %v1340_v33, %v1339_v29  ;;  %v2067_v40 = vpack.c.bf16 %v1372_v34, %v1371_v30  ;;  %v1277_v41 = vadd.f32 %v2421_v21, %v1206_v35  ;;  %v1309_v42 = vadd.f32 %v2421_v21, %v1238_v36 }
 0x182   :  { %v824_v43 = vpop.f32.mrf.mxu0  ;;  %v952_v44 = vpop.f32.mrf.mxu1 }
 0x183   :  { %2099 = vst [vmem:[#allocation8 + $0x58] sm:$0xff] %v1987_v39   ;;  %2115 = vst [vmem:[#allocation8 + $0xd8] sm:$0xff] %v2067_v40   ;;  %v1207_v45 = vmul.f32 %v2415_v17, %v824_v43  ;;  %v1239_v46 = vmul.f32 %v2415_v17, %v952_v44  ;;  %v1341_v51 = vmax.f32 %v1277_v41, 0.0  ;;  %v1373_v52 = vmax.f32 %v1309_v42, 0.0 }
 0x184   :  { %v826_v47 = vpop.f32.mrf.mxu0  ;;  %v954_v48 = vpop.f32.mrf.mxu1 }
 0x185   :  { %v1278_v49 = vadd.f32 %v2421_v21, %v1207_v45  ;;  %v1310_v50 = vadd.f32 %v2421_v21, %v1239_v46 }
 0x186   :  { %v829_v53 = vpop.f32.mrf.mxu0  ;;  %v957_v54 = vpop.f32.mrf.mxu1 }
 0x187   :  { %v1342_v55 = vmax.f32 %v1278_v49, 0.0  ;;  %v1374_v56 = vmax.f32 %v1310_v50, 0.0  ;;  %v1208_v57 = vmul.f32 %v2415_v17, %v829_v53  ;;  %v1240_v58 = vmul.f32 %v2415_v17, %v957_v54 }
 0x188   :  { %v831_v59 = vpop.f32.mrf.mxu0  ;;  %v959_v60 = vpop.f32.mrf.mxu1 }
 0x189   :  { %v1992_v61 = vpack.c.bf16 %v1342_v55, %v1341_v51  ;;  %v2072_v62 = vpack.c.bf16 %v1374_v56, %v1373_v52  ;;  %v1279_v63 = vadd.f32 %v2421_v21, %v1208_v57  ;;  %v1311_v0 = vadd.f32 %v2421_v21, %v1240_v58 }
 0x18a   :  { %v832_v1 = vpop.f32.mrf.mxu0  ;;  %v960_v2 = vpop.f32.mrf.mxu1 }
 0x18b   :  { %2100 = vst [vmem:[#allocation8 + $0x60] sm:$0xff] %v1992_v61   ;;  %2116 = vst [vmem:[#allocation8 + $0xe0] sm:$0xff] %v2072_v62   ;;  %v1209_v3 = vmul.f32 %v2415_v17, %v832_v1  ;;  %v1241_v4 = vmul.f32 %v2415_v17, %v960_v2  ;;  %v1343_v9 = vmax.f32 %v1279_v63, 0.0  ;;  %v1375_v10 = vmax.f32 %v1311_v0, 0.0 }
 0x18c   :  { %v834_v5 = vpop.f32.mrf.mxu0  ;;  %v962_v6 = vpop.f32.mrf.mxu1 }
 0x18d   :  { %v1280_v7 = vadd.f32 %v2421_v21, %v1209_v3  ;;  %v1312_v8 = vadd.f32 %v2421_v21, %v1241_v4 }
 0x18e   :  { %v837_v11 = vpop.f32.mrf.mxu0  ;;  %v965_v12 = vpop.f32.mrf.mxu1 }
 0x18f   :  { %v1344_v13 = vmax.f32 %v1280_v7, 0.0  ;;  %v1376_v14 = vmax.f32 %v1312_v8, 0.0  ;;  %v1210_v15 = vmul.f32 %v2415_v17, %v837_v11  ;;  %v1242_v16 = vmul.f32 %v2415_v17, %v965_v12 }
 0x190   :  { %v839_v18 = vpop.f32.mrf.mxu0  ;;  %v967_v19 = vpop.f32.mrf.mxu1 }
 0x191   :  { %v1997_v20 = vpack.c.bf16 %v1344_v13, %v1343_v9  ;;  %v2077_v22 = vpack.c.bf16 %v1376_v14, %v1375_v10  ;;  %v1281_v23 = vadd.f32 %v2421_v21, %v1210_v15  ;;  %v1313_v24 = vadd.f32 %v2421_v21, %v1242_v16 }
 0x192   :  { %v840_v25 = vpop.f32.mrf.mxu0  ;;  %v968_v26 = vpop.f32.mrf.mxu1 }
 0x193   :  { %2101 = vst [vmem:[#allocation8 + $0x68] sm:$0xff] %v1997_v20   ;;  %2117 = vst [vmem:[#allocation8 + $0xe8] sm:$0xff] %v2077_v22   ;;  %v1211_v27 = vmul.f32 %v2415_v17, %v840_v25  ;;  %v1243_v28 = vmul.f32 %v2415_v17, %v968_v26  ;;  %v1345_v33 = vmax.f32 %v1281_v23, 0.0  ;;  %v1377_v34 = vmax.f32 %v1313_v24, 0.0 }
 0x194   :  { %v842_v29 = vpop.f32.mrf.mxu0  ;;  %v970_v30 = vpop.f32.mrf.mxu1 }
 0x195   :  { %v1282_v31 = vadd.f32 %v2421_v21, %v1211_v27  ;;  %v1314_v32 = vadd.f32 %v2421_v21, %v1243_v28 }
 0x196   :  { %v845_v35 = vpop.f32.mrf.mxu0  ;;  %v973_v36 = vpop.f32.mrf.mxu1 }
 0x197   :  { %v1346_v37 = vmax.f32 %v1282_v31, 0.0  ;;  %v1378_v38 = vmax.f32 %v1314_v32, 0.0  ;;  %v1212_v39 = vmul.f32 %v2415_v17, %v845_v35  ;;  %v1244_v40 = vmul.f32 %v2415_v17, %v973_v36 }
 0x198   :  { %v847_v41 = vpop.f32.mrf.mxu0  ;;  %v975_v42 = vpop.f32.mrf.mxu1 }
 0x199   :  { %v2002_v43 = vpack.c.bf16 %v1346_v37, %v1345_v33  ;;  %v2082_v44 = vpack.c.bf16 %v1378_v38, %v1377_v34  ;;  %v1283_v47 = vadd.f32 %v2421_v21, %v1212_v39  ;;  %v1315_v48 = vadd.f32 %v2421_v21, %v1244_v40 }
 0x19a   :  { %v848_v45 = vpop.f32.mrf.mxu0  ;;  %v976_v46 = vpop.f32.mrf.mxu1 }
 0x19b   :  { %2102 = vst [vmem:[#allocation8 + $0x70] sm:$0xff] %v2002_v43   ;;  %2118 = vst [vmem:[#allocation8 + $0xf0] sm:$0xff] %v2082_v44   ;;  %v1213_v49 = vmul.f32 %v2415_v17, %v848_v45  ;;  %v1245_v50 = vmul.f32 %v2415_v17, %v976_v46  ;;  %v1347_v55 = vmax.f32 %v1283_v47, 0.0  ;;  %v1379_v56 = vmax.f32 %v1315_v48, 0.0 }
 0x19c   :  { %v850_v51 = vpop.f32.mrf.mxu0  ;;  %v978_v52 = vpop.f32.mrf.mxu1 }
 0x19d   :  { %v1284_v53 = vadd.f32 %v2421_v21, %v1213_v49  ;;  %v1316_v54 = vadd.f32 %v2421_v21, %v1245_v50 }
 0x19f   :  { %v1348_v57 = vmax.f32 %v1284_v53, 0.0  ;;  %v1380_v58 = vmax.f32 %v1316_v54, 0.0 }
 0x1a1   :  { %v2007_v59 = vpack.c.bf16 %v1348_v57, %v1347_v55  ;;  %v2087_v60 = vpack.c.bf16 %v1380_v58, %v1379_v56 }
 0x1a3   :  { %2103 = vst [vmem:[#allocation8 + $0x78] sm:$0xff] %v2007_v59   ;;  %2119 = vst [vmem:[#allocation8 + $0xf8] sm:$0xff] %v2087_v60  }
 0x1a4   :  { %2323 = shalt.err (!%p2320_p0)
}
 0x1a5   :  { %1712 = dma.vmem_to_hbm [thread:$0]  %s1707_s3, 4096, %s2560_s4, [#allocation5], %s2342_s25, %s2342_s25, %s2343_s26  }
 0x1a6   :  { %2336 = dma.done.wait [#allocation5], 4096  }
 0x1a7   :  { %2337 = vsyncadd [#allocation5], 4294963200 }
 0x1a8   :  { %1716 = vsyncpa [#allocation4], 1 }
 0x1a9   :  { %1717 = vsyncpa [#allocation7], 1 }
 0x1aa   :  { %1718 = vsyncpa [#allocation5], 1 }

</bundles_post_ra>
